<compile_context>
chip_gen: v5e
topology: v5e:2x2
jax: 0.10.0
libtpu: 0.0.40
codegen_flags: <defaults>
</compile_context>

<pallas_src>
import jax
import jax.numpy as jnp
from jax.experimental import pallas as pl
from jax.experimental.pallas import tpu as pltpu


_LANE = 128
_SUBLANE = 8
_TILE_C_DEFAULT = 1024       # class-axis tile when streaming over large C
_TILE_C_SINGLE_MAX = 2048    # up to this many classes: keep a single C block
_TILE_N_CAP = 1024           # ~2-4 MiB input blocks; roofline is saturated here


def _vmem_capacity_bytes():
    """Physical VMEM per TensorCore; conservative fallback if query fails."""
    try:
        return int(pltpu.get_tpu_info().vmem_capacity_bytes)
    except Exception:
        return 64 * 1024 * 1024  # v7x has the smallest VMEM (64 MiB)


def _make_kernel(C, tile_c, mask_c):
    """Kernel factory; C / tile_c / mask_c are Python-static."""

    def kernel(x_ref, t_ref, loss_ref, acc_ref):
        # acc_ref lanes: 0 = running max m, 1 = running sum l,
        #                2 = sum(targets),  3 = sum(x * targets)
        ci = pl.program_id(1)
        nc = pl.num_programs(1)

        @pl.when(ci == 0)
        def _init():
            lane = jax.lax.broadcasted_iota(jnp.int32, acc_ref.shape, 1)
            acc_ref[...] = jnp.where(lane == 0, -jnp.inf, 0.0).astype(jnp.float32)

        # In-kernel f32 cast: bf16 stays narrow in HBM, math is done in f32.
        x = x_ref[...].astype(jnp.float32)
        t = t_ref[...].astype(jnp.float32)

        def accumulate(x_lse, x_dot, tt):
            # Online logsumexp over the class axis.
            m_prev = acc_ref[:, 0:1]
            m_new = jnp.maximum(m_prev, jnp.max(x_lse, axis=1, keepdims=True))
            alpha = jnp.exp(m_prev - m_new)
            acc_ref[:, 1:2] = (acc_ref[:, 1:2] * alpha
                               + jnp.sum(jnp.exp(x_lse - m_new), axis=1,
                                         keepdims=True))
            acc_ref[:, 0:1] = m_new
            # Soft-label accumulators (algebraic CE form).
            acc_ref[:, 2:3] = acc_ref[:, 2:3] + jnp.sum(tt, axis=1, keepdims=True)
            acc_ref[:, 3:4] = acc_ref[:, 3:4] + jnp.sum(x_dot * tt, axis=1,
                                                        keepdims=True)

        if mask_c:
            # Pay for the class mask only on the ragged last class tile.
            @pl.when(ci != nc - 1)
            def _full_step():
                accumulate(x, x, t)

            @pl.when(ci == nc - 1)
            def _ragged_step():
                col = jax.lax.broadcasted_iota(jnp.int32, x.shape, 1) + ci * tile_c
                valid = col < C
                accumulate(jnp.where(valid, x, -jnp.inf),   # exp contributes 0
                           jnp.where(valid, x, 0.0),        # no garbage*0 NaN
                           jnp.where(valid, t, 0.0))
        else:
            accumulate(x, x, t)

        @pl.when(ci == nc - 1)
        def _finalize():
            # loss = -(sum_c t*(x - lse)) = lse*sum(t) - sum(x*t)
            lse = acc_ref[:, 0:1] + jnp.log(acc_ref[:, 1:2])
            loss = lse * acc_ref[:, 2:3] - acc_ref[:, 3:4]
            loss_ref[...] = loss.astype(loss_ref.dtype)

    return kernel


def ce_soft_label_loss(outputs, targets, *, tile_n=None, tile_c=None):
    """Per-sample soft-label cross-entropy.

    outputs, targets: (N, C); returns loss_vec of shape (N,) in float32.
    """
    N, C = outputs.shape
    assert targets.shape == (N, C), (outputs.shape, targets.shape)

    # Small-C fast path: with C < 128 the last dim under-fills the lane axis,
    # DMAs are tiny and the grid degenerates -> plain XLA is strictly better.
    if C < _LANE:
        x32 = outputs.astype(jnp.float32)
        t32 = targets.astype(jnp.float32)
        return -(jax.nn.log_softmax(x32, axis=1) * t32).sum(axis=1)

    itemsize = max(jnp.dtype(outputs.dtype).itemsize,
                   jnp.dtype(targets.dtype).itemsize)

    # Size blocks to the generation's VMEM (v7x: 64 MiB, v5e/v6e: 128 MiB).
    vmem_cap = _vmem_capacity_bytes()
    vmem_limit = min(int(vmem_cap * 0.7), 100 * 1024 * 1024)

    # ---- class-axis tile ----
    if tile_c is None:
        tile_c = C if C <= _TILE_C_SINGLE_MAX else _TILE_C_DEFAULT
    if tile_c >= C:
        tile_c = C                                   # full class dim, no mask
    else:
        tile_c = max(_LANE, (int(tile_c) // _LANE) * _LANE)
    num_c = pl.cdiv(C, tile_c)
    mask_c = (C % tile_c) != 0

    # ---- row-axis tile ----
    auto_n = tile_n is None
    if auto_n:
        # Per-row bytes: 2 inputs x 2 pipeline buffers at the input dtype,
        # plus two tile_n x tile_c f32 temporaries from the in-kernel casts,
        # plus ~2 KiB/row for the lane-padded scratch + output blocks.
        per_row = tile_c * (4 * itemsize + 2 * 4) + 2 * 1024
        budget = max(vmem_limit - (6 << 20), vmem_limit // 2)  # Mosaic headroom
        tile_n = min(max(budget // per_row, _SUBLANE), _TILE_N_CAP)
    tile_n = max(_SUBLANE, (int(tile_n) // _SUBLANE) * _SUBLANE)
    if tile_n >= N:
        if auto_n and N > _SUBLANE:
            # Keep >=2 row tiles so v7x's two TensorCores both get work.
            half = -(-N // 2)
            tile_n = min(-(-half // _SUBLANE) * _SUBLANE, N)
        else:
            tile_n = N                               # full row dim is legal
    num_n = pl.cdiv(N, tile_n)

    kernel = _make_kernel(C, tile_c, mask_c)

    loss = pl.pallas_call(
        kernel,
        out_shape=jax.ShapeDtypeStruct((N, 1), jnp.float32),
        grid_spec=pltpu.PrefetchScalarGridSpec(
            num_scalar_prefetch=0,
            grid=(num_n, num_c),
            in_specs=[
                pl.BlockSpec((tile_n, tile_c), lambda i, c: (i, c)),
                pl.BlockSpec((tile_n, tile_c), lambda i, c: (i, c)),
            ],
            # Output block index is constant along the (reduction) class axis.
            # (tile_n, 1) output uses masked stores, but output bytes are
            # negligible vs the 2*N*C input traffic this kernel is bound by.
            out_specs=pl.BlockSpec((tile_n, 1), lambda i, c: (i, 0)),
            scratch_shapes=[
                # Packed accumulators (m, l, sum(t), sum(x*t)) in 4 lanes of a
                # single lane-tile -> 512 B/row instead of 4 x 512 B/row.
                pltpu.VMEM((tile_n, _LANE), jnp.float32),
            ],
        ),
        compiler_params=pltpu.CompilerParams(
            dimension_semantics=("parallel", "arbitrary"),
            vmem_limit_bytes=vmem_limit,
        ),
    )(outputs, targets)

    return loss[:, 0]  # (N,)


def _reference(outputs, targets):
    logsm = jax.nn.log_softmax(outputs.astype(jnp.float32), axis=1)
    return -(logsm * targets.astype(jnp.float32)).sum(axis=1)


if __name__ == "__main__":
    key = jax.random.PRNGKey(0)
    k1, k2, k3, k4, k5, k6 = jax.random.split(key, 6)

    # Case 1: kernel path, single class block, auto tiles (>=2 row tiles so the
    # row axis can be shared across TensorCores on v7x).
    N1, C1 = 64, 256
    x1 = jax.random.normal(k1, (N1, C1), dtype=jnp.float32)
    r1 = jax.random.uniform(k2, (N1, C1), dtype=jnp.float32)
    t1 = r1 / r1.sum(axis=1, keepdims=True)          # soft labels
    out1 = ce_soft_label_loss(x1, t1)
    jax.block_until_ready(out1)
    ref1 = _reference(x1, t1)
    assert out1.shape == (N1,)
    assert jnp.allclose(out1, ref1, atol=1e-5, rtol=1e-5), (
        f"case1 max abs err {jnp.max(jnp.abs(out1 - ref1))}")

    # Case 2: streamed class axis (online logsumexp) with a ragged, masked last
    # class tile and partial row tiles.
    N2, C2 = 70, 300
    x2 = jax.random.normal(k3, (N2, C2), dtype=jnp.float32) * 3.0
    r2 = jax.random.uniform(k4, (N2, C2), dtype=jnp.float32)
    t2 = r2 / r2.sum(axis=1, keepdims=True)
    out2 = ce_soft_label_loss(x2, t2, tile_n=16, tile_c=128)
    jax.block_until_ready(out2)
    ref2 = _reference(x2, t2)
    assert out2.shape == (N2,)
    assert jnp.allclose(out2, ref2, atol=1e-4, rtol=1e-4), (
        f"case2 max abs err {jnp.max(jnp.abs(out2 - ref2))}")

    # Case 3: the module's typical small-C usage (e.g. N=64, 10 classes) takes
    # the XLA fast path (the kernel would be strictly worse there).
    N3, C3 = 64, 10
    x3 = jax.random.normal(k5, (N3, C3), dtype=jnp.float32)
    r3 = jax.random.uniform(k6, (N3, C3), dtype=jnp.float32)
    t3 = r3 / r3.sum(axis=1, keepdims=True)
    out3 = ce_soft_label_loss(x3, t3)
    jax.block_until_ready(out3)
    ref3 = _reference(x3, t3)
    assert out3.shape == (N3,)
    assert jnp.allclose(out3, ref3, atol=1e-5, rtol=1e-5), (
        f"case3 max abs err {jnp.max(jnp.abs(out3 - ref3))}")

    # average_loss is computed (but not returned) by the PyTorch module; it is
    # a scalar reduction of the kernel output, done in plain JAX.
    average_loss = out1.mean()
    jax.block_until_ready(average_loss)

    print("KERNEL_OK")
</pallas_src>

<mosaic_0001>
module attributes {stable_mosaic.version = 11 : i64} {
  func.func @kernel(%arg0: i32, %arg1: i32, %arg2: memref<32x256xf32, #tpu.memory_space<vmem>>, %arg3: memref<32x256xf32, #tpu.memory_space<vmem>>, %arg4: memref<32x1xf32, #tpu.memory_space<vmem>>, %arg5: memref<32x128xf32, #tpu.memory_space<vmem>>) attributes {dimension_semantics = [#tpu.dimension_semantics<parallel>, #tpu.dimension_semantics<arbitrary>], iteration_bounds = array<i64: 2, 1>, scalar_prefetch = 0 : i64, scratch_operands = 1 : i64, tpu.core_type = #tpu.core_type<tc>, window_params = [{transform_indices = @transform_0, window_bounds = array<i64: 32, 256>}, {transform_indices = @transform_1, window_bounds = array<i64: 32, 256>}, {transform_indices = @transform_2, window_bounds = array<i64: 32, 1>}]} {
    %c0_i32 = arith.constant 0 : i32
    %0 = arith.cmpi eq, %arg1, %c0_i32 : i32
    %1 = arith.extui %0 : i1 to i32
    %c0_i32_0 = arith.constant 0 : i32
    %2 = arith.cmpi ne, %1, %c0_i32_0 : i32
    scf.if %2 {
      %35 = tpu.iota {dimensions = array<i32: 1>} : vector<32x128xi32>
      %c0_i32_22 = arith.constant 0 : i32
      %36 = vector.broadcast %c0_i32_22 : i32 to vector<32x128xi32>
      %37 = arith.cmpi eq, %35, %36 : vector<32x128xi32>
      %cst_23 = arith.constant 0xFF800000 : f32
      %cst_24 = arith.constant 0.000000e+00 : f32
      %38 = vector.broadcast %cst_23 : f32 to vector<32x128xf32>
      %39 = vector.broadcast %cst_24 : f32 to vector<32x128xf32>
      %40 = arith.select %37, %38, %39 : vector<32x128xi1>, vector<32x128xf32>
      %c0_25 = arith.constant 0 : index
      %c0_26 = arith.constant 0 : index
      %41 = vector.load %arg5[%c0_25, %c0_26] : memref<32x128xf32, #tpu.memory_space<vmem>>, vector<32x128xf32>
      tpu.vector_store %arg5[%c0_25, %c0_26], %40 {strides = array<i32>} : memref<32x128xf32, #tpu.memory_space<vmem>>, vector<32x128xf32>,
    } else {
    }
    %c0 = arith.constant 0 : index
    %c0_1 = arith.constant 0 : index
    %3 = vector.load %arg2[%c0, %c0_1] : memref<32x256xf32, #tpu.memory_space<vmem>>, vector<32x256xf32>
    %c0_2 = arith.constant 0 : index
    %c0_3 = arith.constant 0 : index
    %4 = vector.load %arg3[%c0_2, %c0_3] : memref<32x256xf32, #tpu.memory_space<vmem>>, vector<32x256xf32>
    %c0_4 = arith.constant 0 : index
    %c0_5 = arith.constant 0 : index
    %5 = vector.load %arg5[%c0_4, %c0_5] : memref<32x128xf32, #tpu.memory_space<vmem>>, vector<32x1xf32>
    %cst = arith.constant dense<0xFF800000> : vector<32xf32>
    %6 = vector.multi_reduction <maximumf>, %3, %cst [1] : vector<32x256xf32> to vector<32xf32>
    %7 = vector.shape_cast %6 : vector<32xf32> to vector<32x1xf32>
    %8 = arith.maximumf %5, %7 : vector<32x1xf32>
    %9 = arith.subf %5, %8 : vector<32x1xf32>
    %10 = math.exp %9 : vector<32x1xf32>
    %c0_6 = arith.constant 0 : index
    %c1 = arith.constant 1 : index
    %11 = vector.load %arg5[%c0_6, %c1] : memref<32x128xf32, #tpu.memory_space<vmem>>, vector<32x1xf32>
    %12 = arith.mulf %11, %10 : vector<32x1xf32>
    %13 = vector.broadcast %8 : vector<32x1xf32> to vector<32x256xf32>
    %14 = arith.subf %3, %13 : vector<32x256xf32>
    %15 = math.exp %14 : vector<32x256xf32>
    %cst_7 = arith.constant dense<0.000000e+00> : vector<32xf32>
    %16 = vector.multi_reduction <add>, %15, %cst_7 [1] : vector<32x256xf32> to vector<32xf32>
    %17 = vector.shape_cast %16 : vector<32xf32> to vector<32x1xf32>
    %18 = arith.addf %12, %17 : vector<32x1xf32>
    %c0_8 = arith.constant 0 : index
    %c1_9 = arith.constant 1 : index
    %19 = vector.load %arg5[%c0_8, %c1_9] : memref<32x128xf32, #tpu.memory_space<vmem>>, vector<32x1xf32>
    tpu.vector_store %arg5[%c0_8, %c1_9], %18 {strides = array<i32>} : memref<32x128xf32, #tpu.memory_space<vmem>>, vector<32x1xf32>,
    %c0_10 = arith.constant 0 : index
    %c0_11 = arith.constant 0 : index
    %20 = vector.load %arg5[%c0_10, %c0_11] : memref<32x128xf32, #tpu.memory_space<vmem>>, vector<32x1xf32>
    tpu.vector_store %arg5[%c0_10, %c0_11], %8 {strides = array<i32>} : memref<32x128xf32, #tpu.memory_space<vmem>>, vector<32x1xf32>,
    %c0_12 = arith.constant 0 : index
    %c2 = arith.constant 2 : index
    %21 = vector.load %arg5[%c0_12, %c2] : memref<32x128xf32, #tpu.memory_space<vmem>>, vector<32x1xf32>
    %cst_13 = arith.constant dense<0.000000e+00> : vector<32xf32>
    %22 = vector.multi_reduction <add>, %4, %cst_13 [1] : vector<32x256xf32> to vector<32xf32>
    %23 = vector.shape_cast %22 : vector<32xf32> to vector<32x1xf32>
    %24 = arith.addf %21, %23 : vector<32x1xf32>
    %c0_14 = arith.constant 0 : index
    %c2_15 = arith.constant 2 : index
    %25 = vector.load %arg5[%c0_14, %c2_15] : memref<32x128xf32, #tpu.memory_space<vmem>>, vector<32x1xf32>
    tpu.vector_store %arg5[%c0_14, %c2_15], %24 {strides = array<i32>} : memref<32x128xf32, #tpu.memory_space<vmem>>, vector<32x1xf32>,
    %c0_16 = arith.constant 0 : index
    %c3 = arith.constant 3 : index
    %26 = vector.load %arg5[%c0_16, %c3] : memref<32x128xf32, #tpu.memory_space<vmem>>, vector<32x1xf32>
    %27 = arith.mulf %3, %4 : vector<32x256xf32>
    %cst_17 = arith.constant dense<0.000000e+00> : vector<32xf32>
    %28 = vector.multi_reduction <add>, %27, %cst_17 [1] : vector<32x256xf32> to vector<32xf32>
    %29 = vector.shape_cast %28 : vector<32xf32> to vector<32x1xf32>
    %30 = arith.addf %26, %29 : vector<32x1xf32>
    %c0_18 = arith.constant 0 : index
    %c3_19 = arith.constant 3 : index
    %31 = vector.load %arg5[%c0_18, %c3_19] : memref<32x128xf32, #tpu.memory_space<vmem>>, vector<32x1xf32>
    tpu.vector_store %arg5[%c0_18, %c3_19], %30 {strides = array<i32>} : memref<32x128xf32, #tpu.memory_space<vmem>>, vector<32x1xf32>,
    %c0_i32_20 = arith.constant 0 : i32
    %32 = arith.cmpi eq, %arg1, %c0_i32_20 : i32
    %33 = arith.extui %32 : i1 to i32
    %c0_i32_21 = arith.constant 0 : i32
    %34 = arith.cmpi ne, %33, %c0_i32_21 : i32
    scf.if %34 {
      %c0_22 = arith.constant 0 : index
      %c0_23 = arith.constant 0 : index
      %35 = vector.load %arg5[%c0_22, %c0_23] : memref<32x128xf32, #tpu.memory_space<vmem>>, vector<32x1xf32>
      %c0_24 = arith.constant 0 : index
      %c1_25 = arith.constant 1 : index
      %36 = vector.load %arg5[%c0_24, %c1_25] : memref<32x128xf32, #tpu.memory_space<vmem>>, vector<32x1xf32>
      %37 = math.log %36 : vector<32x1xf32>
      %38 = arith.addf %35, %37 : vector<32x1xf32>
      %c0_26 = arith.constant 0 : index
      %c2_27 = arith.constant 2 : index
      %39 = vector.load %arg5[%c0_26, %c2_27] : memref<32x128xf32, #tpu.memory_space<vmem>>, vector<32x1xf32>
      %40 = arith.mulf %38, %39 : vector<32x1xf32>
      %c0_28 = arith.constant 0 : index
      %c3_29 = arith.constant 3 : index
      %41 = vector.load %arg5[%c0_28, %c3_29] : memref<32x128xf32, #tpu.memory_space<vmem>>, vector<32x1xf32>
      %42 = arith.subf %40, %41 : vector<32x1xf32>
      %c0_30 = arith.constant 0 : index
      %c0_31 = arith.constant 0 : index
      %43 = vector.load %arg4[%c0_30, %c0_31] : memref<32x1xf32, #tpu.memory_space<vmem>>, vector<32x1xf32>
      tpu.vector_store %arg4[%c0_30, %c0_31], %42 {strides = array<i32>} : memref<32x1xf32, #tpu.memory_space<vmem>>, vector<32x1xf32>,
    } else {
    }
    return
  }
  func.func @transform_0(%arg0: i32, %arg1: i32) -> (i32, i32) {
    %c0_i32 = arith.constant 0 : i32
    return %arg0, %arg1 : i32, i32
  }
  func.func @transform_1(%arg0: i32, %arg1: i32) -> (i32, i32) {
    %c0_i32 = arith.constant 0 : i32
    return %arg0, %arg1 : i32, i32
  }
  func.func @transform_2(%arg0: i32, %arg1: i32) -> (i32, i32) {
    %c0_i32 = arith.constant 0 : i32
    %c0_i32_0 = arith.constant 0 : i32
    return %arg0, %c0_i32 : i32, i32
  }
}

</mosaic_0001>

<bundles_post_ra>
// kernel: tpu_custom_call.1
= control target key start
LH: loop header
LB: loop body
LE: loop exit
PB: predicated region body
PF: predicated region fallthrough
CT: control target
= control target key end

     0   :  { %7 = vsyncpa [#allocation4], 0  ;;  %s1115_s0 = inlined_call_operand.hbm [shape: f32[64,256], index: 0, kind: input, shape index: {}]   ;;  %s1116_s1 = inlined_call_operand.hbm [shape: f32[64,256], index: 1, kind: input, shape index: {}]   ;;  %s1117_s2 = inlined_call_operand.vmem [shape: f32[64,1], index: 2, kind: output, shape index: {}]  }
   0x1   :  { %9 = vsyncpa [#allocation4 + $0x1], 0 }
   0x2   :  { %10 = vsyncpa [#allocation6], 0 }
   0x3   :  { %12 = vsyncpa [#allocation6 + $0x1], 0  ;;  %s888_s9 = smov 0   ;;  %s890_s10 = smov 0  }
   0x4   :  { %s892_s11 = smov 0   ;;  %s894_s12 = smov 0  }
   0x5   :  { %s896_s13 = smov 0   ;;  %s898_s14 = smov 0  }
   0x6 LB: > { %s623_s15 = sadd.s32 4294967295, %s863_s14   ;;  %s30_s16 = sadd.s32 1, %s859_s13  ;;  %s863_s14 = sphi %s898_s14, %s18_s14   ;;  %s859_s13 = sphi %s896_s13, %s1125_s13   ;;  %s855_s12 = sphi %s894_s12, %s1124_s12   ;;  %s851_s11 = sphi %s892_s11, %s1123_s11   ;;  %s847_s10 = sphi %s890_s10, %s1122_s10   ;;  %s843_s9 = sphi %s888_s9, %s1121_s9  }
   0x7   : > { %p32_p0 = scmp.ge.s32.totalorder %s30_s16, 2  ;;  %s39_s17 = sadd.s32 1, %s851_s11 }
   0x8   : > { %p46_p1 = scmp.ne.s32.totalorder %s851_s11, %s847_s10  ;;  %p47_p2 = scmp.eq.s32.totalorder %s863_s14, 0 }
   0x9   : > { %s1127_s16 = smov (%p32_p0, %s30_s16), 0  ;;  %p52_p4 = scmp.ne.s32.totalorder %s847_s10, %s843_s9 }
   0xa   : > { %p924_p3 = por %p47_p2, %p46_p1  ;;  %s34_s19 = ssub.s32 %s859_s13, %s1127_s16 }
   0xb   : > { %p53_p5 = scmp.eq.s32.totalorder %s623_s15, 0  ;;  %p37_p6 = scmp.eq.s32.totalorder %s34_s19, 0 }
   0xc   : > { %p657_p8 = scmp.lt.s32.totalorder %s863_s14, 2  ;;  %s940_s22 = sand.u32 1, %s851_s11  }
   0xd   : > { %p931_p7 = por %p53_p5, %p52_p4  ;;  %s643_s23 = sshll.u32 %s859_s13, 6 }
   0xe   : > { %s937_s21 = scalar_select %p37_p6, %s851_s11, %s39_s17  }
   0xf   : > { %s627_s24 = sshll.u32 %s940_s22, 6  ;;  %s142_s27 = scalar_lea.hbm %s1115_s0, %s643_s23 }
  0x10   : > { %s143_s28 = sshll.u32 %s142_s27, 4  ;;  %s134_s29 = scalar_lea.vmem [#allocation3], %s627_s24  ;;  %s144_s28 = int_to_ptr.hbm [resolvable:$true] %s143_s28 }
  0x11   : > { %s145_s30 = sshll.u32 %s134_s29, 4  ;;  %p949_p9 = pnand %p657_p8, %p924_p3  ;;  %s146_s30 = int_to_ptr.vmem [resolvable:$true] %s145_s30 }
  0x12   : > { %p635_p10 = scmp.ge.s32.totalorder %s863_s14, 1  ;;  %p178_p11 = scmp.lt.s32.totalorder %s863_s14, 3 }
  0x13   : > { %s131_s4 = scalar_lea.sflag [#allocation4], %s940_s22  ;;  %s865_s5 = smov 256  }
  0x14   : > { %s866_s6 = smov 16   ;;  %p179_p12 = pnand %p635_p10, %p178_p11 }
  0x15   : > { %653 = dma.hbm_to_vmem [thread:$0]  (!%p949_p9), %s144_s28, 1024, %s146_s30, %s131_s4, %s865_s5, %s865_s5, %s866_s6  }
  0x16   : > { %s167_s9 = scalar_lea.hbm %s1116_s1, %s643_s23  ;;  %s159_s17 = scalar_lea.vmem [#allocation5], %s627_s24 }
  0x17   : > { %s168_s15 = sshll.u32 %s167_s9, 4  ;;  %s170_s18 = sshll.u32 %s159_s17, 4  ;;  %s169_s15 = int_to_ptr.hbm [resolvable:$true] %s168_s15  ;;  %s171_s18 = int_to_ptr.vmem [resolvable:$true] %s170_s18 }
  0x18   : > { %s156_s19 = scalar_lea.sflag [#allocation6], %s940_s22  ;;  %182 = sbr.rel (%p179_p12) target bundleno = 582 (0x246), region = 28 }
  0x19   : > { %656 = dma.hbm_to_vmem [thread:$0]  (!%p949_p9), %s169_s15, 1024, %s171_s18, %s156_s19, %s865_s5, %s865_s5, %s866_s6  }
  0x1a   : > { %s184_s25 = sand.u32 (!%p179_p12), 1, %s847_s10  }
  0x1b   : > { %s636_s26 = sshll.u32 (!%p179_p12), %s184_s25, 6  ;;  %s185_s27 = scalar_lea.sflag (!%p179_p12), [#allocation4], %s184_s25 }
  0x1c   : > { %s188_s28 = scalar_lea.vmem (!%p179_p12), [#allocation3], %s636_s26 }
  0x1d   : > { %834 = dma.done.wait (%p931_p7), %s185_s27, 1024  }
  0x1e   : > { %836 = vsyncadd (%p931_p7), %s185_s27, 4294966272  ;;  %s195_s23 = scalar_lea.sflag [#allocation6], %s184_s25  ;;  %s969_s24 = scalar_lea.vmem [#allocation5], %s636_s26 }
  0x1f   : > { %838 = dma.done.wait (%p931_p7), %s195_s23, 1024  }
  0x20   : > { %840 = vsyncadd (%p931_p7), %s195_s23, 4294966272  ;;  %v239_v0 = vlaneseq  ;;  %v867_v2 = vmov 0.0   ;;  %v978_v4 = vld [vmem:[%s188_s28 + $0x20] sm:$0xff]  ;;  %v980_v5 = vld [vmem:[%s188_s28 + $0x28] sm:$0xff]  ;;  %v868_v16 = vmov 0   ;;  %s869_s20 = smov 1  }
  0x21   : > { %v982_v6 = vld [vmem:[%s188_s28] sm:$0xff]  ;;  %v273_v7 = vmax.f32 %v978_v4, %v980_v5  ;;  %v987_v8 = vld [vmem:[%s188_s28 + $0x8] sm:$0xff]  ;;  %v993_v10 = vld [vmem:[%s188_s28 + $0x30] sm:$0xff]  ;;  %715 = vset.pattern.permute.xlu0 %v868_v16  ;;  %714 = vset.pattern.permute.xlu2 %v868_v16  ;;  %vm375_vm1 = vcmask 15368   ;;  %vm380_vm2 = vcmask 7168   ;;  %vm405_vm3 = vcmask 23568  }
  0x22   : > { %v240_v1 = vand.u32 127, %v239_v0  ;;  %v267_v9 = vmax.f32 %v982_v6, %v987_v8  ;;  %v995_v11 = vld [vmem:[%s188_s28 + $0x38] sm:$0xff]  ;;  %v997_v12 = vld [vmem:[%s188_s28 + $0x10] sm:$0xff]  ;;  %716 = vset.pattern.permute.xlu1 %v868_v16  ;;  %v255_v50 = vld [vmem:[%s969_s24] sm:$0xff]  ;;  %vm438_vm4 = vcmask 31768   ;;  %s870_s22 = smov 125  }
  0x23   : > { %274 = vmax.xlane.f32.xlu1 %v273_v7  ;;  %v999_v13 = vld [vmem:[%s188_s28 + $0x18] sm:$0xff]  ;;  %v276_v14 = vmax.f32 %v993_v10, %v995_v11  ;;  %v256_v51 = vld [vmem:[%s969_s24 + $0x8] sm:$0xff]  ;;  %v259_v59 = vld [vmem:[%s969_s24 + $0x20] sm:$0xff]  ;;  %s871_s29 = smov 126   ;;  %s872_s30 = smov 127  }
  0x24   : > { %vm241_vm0 = vcmp.eq.s32.totalorder %v240_v1, 0  ;;  %268 = vmax.xlane.f32.xlu0 %v267_v9  ;;  %v270_v15 = vmax.f32 %v997_v12, %v999_v13  ;;  %v389_v53 = vadd.f32 %v256_v51, %v255_v50  ;;  %v260_v60 = vld [vmem:[%s969_s24 + $0x28] sm:$0xff]  ;;  %v414_v1 = vmul.f32 %v255_v50, %v982_v6  ;;  %s638_s3 = sshll.u32 %s855_s12, 2 }
  0x25   : > { %v975_v3 = vsel %vm241_vm0, -inf, %v867_v2  ;;  %v395_v63 = vadd.f32 %v260_v60, %v259_v59  ;;  %v415_v2 = vmul.f32 %v256_v51, %v987_v8  ;;  %p230_p13 = scmp.lt.s32.totalorder %s638_s3, 7 }
  0x26   : > { %245 = vst [vmem:[#allocation2 + $0x10] sm:$0xff] %v975_v3 }
  0x27   : > { %243 = vst [vmem:[#allocation2] sm:$0xff] %v975_v3  ;;  %s1129_s3 = smov (!%p230_p13, %s638_s3), 7 }
  0x28   : > { %244 = vst [vmem:[#allocation2 + $0x8] sm:$0xff] %v975_v3  ;;  %s639_s4 = sshll.u32 %s1129_s3, 3 }
  0x29   : > { %246 = vst [vmem:[#allocation2 + $0x18] sm:$0xff] %v975_v3  ;;  %s233_s7 = scalar_lea.vmem %s1117_s2, %s639_s4 }
  0x2b   : > { %277 = vmax.xlane.f32.xlu1 %v276_v14 }
  0x2c   : > { %271 = vmax.xlane.f32.xlu0 %v270_v15 }
  0x96   : > { %v275_v17 = vpop.xlane.xlu1 %274 }
  0x97   : > { %v1006_v18 = vmax.f32 %v975_v3, %v275_v17  ;;  %v269_v19 = vpop.xlane.xlu0 %268 }
  0x98   : > { %v1009_v20 = vmax.f32 %v975_v3, %v269_v19  ;;  %v422_v19 = vadd.f32 %v415_v2, %v414_v1 }
  0x99   : > { %327 = vperm.xlu0 %715, %v1006_v18   ;;  %v285_v21 = vsub.f32 %v975_v3, %v1006_v18 }
  0x9a   : > { %v283_v22 = vsub.f32 %v975_v3, %v1009_v20  ;;  %317 = vperm.xlu2 %714, %v1009_v20  }
  0x9b   : > { %v291_v24 = vmul.f32 1.442695, %v285_v21 }
  0x9c   : > { %v287_v23 = vmul.f32 1.442695, %v283_v22  ;;  %v419_v22 = vmul.f32 %v260_v60, %v980_v5 }
  0x9e   : > { %v278_v25 = vpop.xlane.xlu1 %277  ;;  %717 = vpow2.f32 %v287_v23  ;;  %v262_v23 = vld [vmem:[%s969_s24 + $0x38] sm:$0xff] }
  0x9f   : > { %v1018_v26 = vmax.f32 %v975_v3, %v278_v25  ;;  %v272_v27 = vpop.xlane.xlu0 %271  ;;  %719 = vpow2.f32 %v291_v24  ;;  %v421_v25 = vmul.f32 %v262_v23, %v995_v11 }
  0xa0   : > { %v1021_v28 = vmax.f32 %v975_v3, %v272_v27 }
  0xa1   : > { %v286_v29 = vsub.f32 %v975_v3, %v1018_v26  ;;  %332 = vperm.xlu1 %716, %v1018_v26  }
  0xa2   : > { %v284_v30 = vsub.f32 %v975_v3, %v1021_v28  ;;  %322 = vperm.xlu2 %714, %v1021_v28  }
  0xa3   : > { %v293_v31 = vmul.f32 1.442695, %v286_v29 }
  0xa4   : > { %v289_v32 = vmul.f32 1.442695, %v284_v30  ;;  %v718_v33 = vpop.eup %717 }
  0xa5   : > { %721 = vpow2.f32 %v293_v31  ;;  %v720_v34 = vpop.eup %719 }
  0xa6   : > { %723 = vpow2.f32 %v289_v32 }
  0xa9   : > { %303 = vrot.lane.b32.xlu1 %v720_v34, %s869_s20  ;;  %v258_v34 = vld [vmem:[%s969_s24 + $0x18] sm:$0xff] }
  0xaa   : > { %299 = vrot.lane.b32.xlu2 %v718_v33, %s869_s20  ;;  %v257_v33 = vld [vmem:[%s969_s24 + $0x10] sm:$0xff] }
  0xab   : > { %v722_v35 = vpop.eup %721 }
  0xac   : > { %305 = vrot.lane.b32.xlu0 %v722_v35, %s869_s20  ;;  %v724_v36 = vpop.eup %723  ;;  %v416_v35 = vmul.f32 %v257_v33, %v997_v12 }
  0xb2   : > { %301 = vrot.lane.b32.xlu2 %v724_v36, %s869_s20 }
  0xf4   : > { %v318_v37 = vpop.permute.xlu2 %317 }
  0xf5   : > { %v335_v38 = vsub.f32 %v982_v6, %v318_v37  ;;  %v336_v39 = vsub.f32 %v987_v8, %v318_v37  ;;  %v418_v6 = vmul.f32 %v259_v59, %v978_v4  ;;  %v261_v8 = vld [vmem:[%s969_s24 + $0x30] sm:$0xff] }
  0xf6   : > { %v420_v24 = vmul.f32 %v261_v8, %v993_v10 }
  0xf7   : > { %v343_v40 = vmul.f32 1.442695, %v335_v38  ;;  %v345_v41 = vmul.f32 1.442695, %v336_v39  ;;  %v428_v29 = vadd.f32 %v419_v22, %v418_v6 }
  0xf8   : > { %v431_v31 = vadd.f32 %v421_v25, %v420_v24 }
  0xf9   : > { %725 = vpow2.f32 %v343_v40 }
  0xfa   : > { %727 = vpow2.f32 %v345_v41 }
  0xfc   : > { %v323_v42 = vpop.permute.xlu2 %322 }
  0xfd   : > { %v337_v43 = vsub.f32 %v997_v12, %v323_v42  ;;  %v338_v44 = vsub.f32 %v999_v13, %v323_v42 }
  0xff   : > { %v726_v45 = vpop.eup %725  ;;  %v347_v46 = vmul.f32 1.442695, %v337_v43  ;;  %v349_v47 = vmul.f32 1.442695, %v338_v44 }
 0x100   : > { %v728_v48 = vpop.eup %727 }
 0x101   : > { %729 = vpow2.f32 %v347_v46  ;;  %v359_v49 = vadd.f32 %v728_v48, %v726_v45 }
 0x102   : > { %731 = vpow2.f32 %v349_v47 }
 0x103   : > { %360 = vadd.xlane.f32.xlu2 %v359_v49 }
 0x107   : > { %v730_v52 = vpop.eup %729 }
 0x108   : > { %v732_v54 = vpop.eup %731 }
 0x109   : > { %v362_v55 = vadd.f32 %v732_v54, %v730_v52 }
 0x10b   : > { %363 = vadd.xlane.f32.xlu1 %v362_v55  ;;  %v328_v56 = vpop.permute.xlu0 %327  ;;  %390 = vadd.xlane.f32.xlu2 %v389_v53 }
 0x10c   : > { %v339_v57 = vsub.f32 %v978_v4, %v328_v56  ;;  %v340_v58 = vsub.f32 %v980_v5, %v328_v56  ;;  %v392_v4 = vadd.f32 %v258_v34, %v257_v33  ;;  %v398_v5 = vadd.f32 %v262_v23, %v261_v8 }
 0x10e   : > { %v351_v61 = vmul.f32 1.442695, %v339_v57  ;;  %v353_v62 = vmul.f32 1.442695, %v340_v58 }
 0x110   : > { %733 = vpow2.f32 %v351_v61 }
 0x111   : > { %735 = vpow2.f32 %v353_v62 }
 0x113   : > { %396 = vadd.xlane.f32.xlu1 %v395_v63  ;;  %v333_v0 = vpop.permute.xlu1 %332 }
 0x114   : > { %v341_v7 = vsub.f32 %v993_v10, %v333_v0  ;;  %v342_v9 = vsub.f32 %v995_v11, %v333_v0  ;;  %v417_v10 = vmul.f32 %v258_v34, %v999_v13  ;;  %v300_v11 = vpop.permute.xlu2 %299 }
 0x115   : > { %v311_v38 = vmul.f32 %v300_v11, %v975_v3 }
 0x116   : > { %v734_v14 = vpop.eup %733  ;;  %v355_v15 = vmul.f32 1.442695, %v341_v7  ;;  %v357_v16 = vmul.f32 1.442695, %v342_v9  ;;  %v425_v36 = vadd.f32 %v417_v10, %v416_v35 }
 0x117   : > { %v736_v17 = vpop.eup %735 }
 0x118   : > { %737 = vpow2.f32 %v355_v15  ;;  %v365_v21 = vadd.f32 %v736_v17, %v734_v14 }
 0x119   : > { %739 = vpow2.f32 %v357_v16 }
 0x11a   : > { %366 = vadd.xlane.f32.xlu0 %v365_v21 }
 0x11b   : > { %423 = vadd.xlane.f32.xlu1 %v422_v19  ;;  %v304_v39 = vpop.permute.xlu1 %303 }
 0x11c   : > { %v302_v37 = vpop.permute.xlu2 %301  ;;  %v313_v48 = vmul.f32 %v304_v39, %v975_v3 }
 0x11d   : > { %v312_v12 = vmul.f32 %v302_v37, %v975_v3 }
 0x11e   : > { %v738_v27 = vpop.eup %737  ;;  %v306_v46 = vpop.permute.xlu0 %305 }
 0x11f   : > { %v740_v30 = vpop.eup %739 }
 0x120   : > { %v368_v32 = vadd.f32 %v740_v30, %v738_v27 }
 0x122   : > { %369 = vadd.xlane.f32.xlu2 %v368_v32  ;;  %429 = vadd.xlane.f32.xlu0 %v428_v29 }
 0x123   : > { %432 = vadd.xlane.f32.xlu1 %v431_v31 }
 0x12a   : > { %393 = vadd.xlane.f32.xlu2 %v392_v4 }
 0x132   : > { %399 = vadd.xlane.f32.xlu2 %v398_v5 }
 0x13a   : > { %426 = vadd.xlane.f32.xlu2 %v425_v36 }
 0x176   : > { %v361_v40 = vpop.xlane.xlu2 %360 }
 0x177   : > { %v371_v41 = vadd.f32 %v361_v40, %v311_v38 }
 0x179   : > { %376 = vst.msk [vmem:[#allocation2] sm:$0xff] %vm375_vm1, %v371_v41 }
 0x17a   : > { %381 = vst.msk [vmem:[#allocation2] sm:$0xff] %vm380_vm2, %v1009_v20 }
 0x17e   : > { %v364_v42 = vpop.xlane.xlu1 %363  ;;  %v391_v43 = vpop.xlane.xlu2 %390 }
 0x17f   : > { %v372_v13 = vadd.f32 %v364_v42, %v312_v12 }
 0x181   : > { %377 = vst.msk [vmem:[#allocation2 + $0x8] sm:$0xff] %vm375_vm1, %v372_v13  ;;  %v385_v44 = vld [vmem:[#allocation2] sm:$0xff] }
 0x182   : > { %v401_v45 = vadd.f32 %v391_v43, %v385_v44  ;;  %382 = vst.msk [vmem:[#allocation2 + $0x8] sm:$0xff] %vm380_vm2, %v1021_v28  ;;  %v314_v28 = vmul.f32 %v306_v46, %v975_v3 }
 0x184   : > { %406 = vst.msk [vmem:[#allocation2] sm:$0xff] %vm405_vm3, %v401_v45 }
 0x186   : > { %v397_v47 = vpop.xlane.xlu1 %396 }
 0x189   : > { %v386_v3 = vld [vmem:[#allocation2 + $0x8] sm:$0xff] }
 0x18b   : > { %v410_v51 = vld [vmem:[#allocation2] sm:$0xff] }
 0x18d   : > { %v367_v20 = vpop.xlane.xlu0 %366 }
 0x18e   : > { %v373_v49 = vadd.f32 %v367_v20, %v313_v48  ;;  %v424_v50 = vpop.xlane.xlu1 %423 }
 0x18f   : > { %v434_v52 = vadd.f32 %v424_v50, %v410_v51 }
 0x190   : > { %378 = vst.msk [vmem:[#allocation2 + $0x10] sm:$0xff] %vm375_vm1, %v373_v49 }
 0x191   : > { %383 = vst.msk [vmem:[#allocation2 + $0x10] sm:$0xff] %vm380_vm2, %v1006_v18 }
 0x192   : > { %439 = vst.msk [vmem:[#allocation2] sm:$0xff] %vm438_vm4, %v434_v52 }
 0x195   : > { %v370_v53 = vpop.xlane.xlu2 %369  ;;  %v430_v60 = vpop.xlane.xlu0 %429 }
 0x196   : > { %v374_v54 = vadd.f32 %v370_v53, %v314_v28  ;;  %v433_v14 = vpop.xlane.xlu1 %432 }
 0x198   : > { %379 = vst.msk [vmem:[#allocation2 + $0x18] sm:$0xff] %vm375_vm1, %v374_v54  ;;  %v387_v55 = vld [vmem:[#allocation2 + $0x10] sm:$0xff] }
 0x199   : > { %384 = vst.msk [vmem:[#allocation2 + $0x18] sm:$0xff] %vm380_vm2, %v1018_v26  ;;  %v446_v56 = vld [vmem:[#allocation2] sm:$0xff]  ;;  %v403_v57 = vadd.f32 %v397_v47, %v387_v55 }
 0x19a   : > { %498 = vrot.lane.b32.xlu2 %v446_v56, %s870_s22  ;;  %482 = vrot.lane.b32.xlu0 %v446_v56, %s871_s29  ;;  %741 = vlog2.f32 %v446_v56 }
 0x19b   : > { %408 = vst.msk [vmem:[#allocation2 + $0x10] sm:$0xff] %vm405_vm3, %v403_v57 }
 0x19d   : > { %v394_v18 = vpop.xlane.xlu2 %393 }
 0x19e   : > { %v402_v58 = vadd.f32 %v394_v18, %v386_v3 }
 0x1a0   : > { %v742_v59 = vpop.eup %741  ;;  %407 = vst.msk [vmem:[#allocation2 + $0x8] sm:$0xff] %vm405_vm3, %v402_v58  ;;  %v388_v63 = vld [vmem:[#allocation2 + $0x18] sm:$0xff] }
 0x1a1   : > { %v451_v61 = vmul.f32 0.6931472, %v742_v59 }
 0x1a2   : > { %v412_v26 = vld [vmem:[#allocation2 + $0x10] sm:$0xff] }
 0x1a3   : > { %462 = vrot.lane.b32.xlu2 %v451_v61, %s872_s30  ;;  %v436_v62 = vadd.f32 %v430_v60, %v412_v26 }
 0x1a5   : > { %441 = vst.msk [vmem:[#allocation2 + $0x10] sm:$0xff] %vm438_vm4, %v436_v62  ;;  %v400_v0 = vpop.xlane.xlu2 %399 }
 0x1a6   : > { %v404_v1 = vadd.f32 %v400_v0, %v388_v63 }
 0x1a7   : > { %v411_v7 = vld [vmem:[#allocation2 + $0x8] sm:$0xff] }
 0x1a8   : > { %409 = vst.msk [vmem:[#allocation2 + $0x18] sm:$0xff] %vm405_vm3, %v404_v1 }
 0x1ac   : > { %v448_v2 = vld [vmem:[#allocation2 + $0x10] sm:$0xff] }
 0x1ad   : > { %486 = vrot.lane.b32.xlu0 %v448_v2, %s871_s29  ;;  %v427_v9 = vpop.xlane.xlu2 %426 }
 0x1ae   : > { %v435_v15 = vadd.f32 %v427_v9, %v411_v7 }
 0x1af   : > { %v413_v16 = vld [vmem:[#allocation2 + $0x18] sm:$0xff] }
 0x1b0   : > { %440 = vst.msk [vmem:[#allocation2 + $0x8] sm:$0xff] %vm438_vm4, %v435_v15  ;;  %v437_v17 = vadd.f32 %v433_v14, %v413_v16 }
 0x1b2   : > { %442 = vst.msk [vmem:[#allocation2 + $0x18] sm:$0xff] %vm438_vm4, %v437_v17 }
 0x1b7   : > { %v447_v19 = vld [vmem:[#allocation2 + $0x8] sm:$0xff] }
 0x1b8   : > { %484 = vrot.lane.b32.xlu1 %v447_v19, %s871_s29  ;;  %743 = vlog2.f32 %v447_v19 }
 0x1b9   : > { %v449_v21 = vld [vmem:[#allocation2 + $0x18] sm:$0xff] }
 0x1ba   : > { %745 = vlog2.f32 %v449_v21 }
 0x1bb   : > { %747 = vlog2.f32 %v448_v2 }
 0x1be   : > { %v744_v6 = vpop.eup %743 }
 0x1bf   : > { %v453_v22 = vmul.f32 0.6931472, %v744_v6 }
 0x1c0   : > { %v746_v8 = vpop.eup %745  ;;  %488 = vrot.lane.b32.xlu1 %v449_v21, %s871_s29 }
 0x1c1   : > { %464 = vrot.lane.b32.xlu0 %v453_v22, %s872_s30  ;;  %v457_v23 = vmul.f32 0.6931472, %v746_v8  ;;  %v748_v24 = vpop.eup %747 }
 0x1c2   : > { %v455_v25 = vmul.f32 0.6931472, %v748_v24 }
 0x1c3   : > { %468 = vrot.lane.b32.xlu2 %v457_v23, %s872_s30 }
 0x1c8   : > { %466 = vrot.lane.b32.xlu1 %v455_v25, %s872_s30 }
 0x1c9   : > { %500 = vrot.lane.b32.xlu0 %v447_v19, %s870_s22 }
 0x1cb   : > { %502 = vrot.lane.b32.xlu2 %v448_v2, %s870_s22 }
 0x1d0   : > { %504 = vrot.lane.b32.xlu1 %v449_v21, %s870_s22 }
 0x1f4   : > { %v499_v27 = vpop.permute.xlu2 %498 }
 0x1fd   : > { %v463_v29 = vpop.permute.xlu2 %462 }
 0x1fe   : > { %v474_v30 = vadd.f32 %v463_v29, %v446_v56 }
 0x20c   : > { %v483_v31 = vpop.permute.xlu0 %482 }
 0x20d   : > { %v494_v32 = vmul.f32 %v483_v31, %v474_v30 }
 0x20f   : > { %v510_v33 = vsub.f32 %v494_v32, %v499_v27 }
 0x211   : > { %514 = vst.msk [vmem:[%s233_s7] sm:$0xff] %vm380_vm2, %v510_v33 }
 0x21d   : > { %v469_v10 = vpop.permute.xlu2 %468 }
 0x21e   : > { %v477_v42 = vadd.f32 %v469_v10, %v449_v21 }
 0x21f   : > { %v487_v4 = vpop.permute.xlu0 %486 }
 0x225   : > { %v503_v12 = vpop.permute.xlu2 %502 }
 0x22a   : > { %v485_v34 = vpop.permute.xlu1 %484 }
 0x232   : > { %v489_v5 = vpop.permute.xlu1 %488 }
 0x233   : > { %v465_v35 = vpop.permute.xlu0 %464  ;;  %v497_v43 = vmul.f32 %v489_v5, %v477_v42 }
 0x234   : > { %v475_v36 = vadd.f32 %v465_v35, %v447_v19 }
 0x236   : > { %v495_v37 = vmul.f32 %v485_v34, %v475_v36 }
 0x23a   : > { %v467_v11 = vpop.permute.xlu1 %466 }
 0x23b   : > { %v476_v38 = vadd.f32 %v467_v11, %v448_v2  ;;  %v501_v39 = vpop.permute.xlu0 %500 }
 0x23c   : > { %v511_v40 = vsub.f32 %v495_v37, %v501_v39 }
 0x23d   : > { %v496_v41 = vmul.f32 %v487_v4, %v476_v38 }
 0x23e   : > { %515 = vst.msk [vmem:[%s233_s7 + $0x8] sm:$0xff] %vm380_vm2, %v511_v40 }
 0x23f   : > { %v512_v13 = vsub.f32 %v496_v41, %v503_v12 }
 0x241   : > { %516 = vst.msk [vmem:[%s233_s7 + $0x10] sm:$0xff] %vm380_vm2, %v512_v13 }
 0x242   : > { %v505_v44 = vpop.permute.xlu1 %504 }
 0x243   : > { %v513_v45 = vsub.f32 %v497_v43, %v505_v44 }
 0x245   : > { %517 = vst.msk [vmem:[%s233_s7 + $0x18] sm:$0xff] %vm380_vm2, %v513_v45 }
 0x246 PF: > { %s18_s14 = sadd.s32 1, %s863_s14   ;;  %s1121_s9 = smov %s847_s10 }
 0x247   : > { %p15_p0 = scmp.ge.s32.totalorder %s18_s14, 4   ;;  %s1122_s10 = smov %s851_s11 }
 0x248   : > { %s1123_s11 = smov %s937_s21  ;;  %s1124_s12 = smov %s859_s13 }
 0x249   : > { %s1125_s13 = smov %s1127_s16  ;;  %17 = sbr.rel (!%p15_p0) target bundleno = 6 (0x6), region = 89 }
 0x24e   :  { %540 = vsyncpa [#allocation4], 1 }
 0x24f   :  { %542 = vsyncpa [#allocation4 + $0x1], 1 }
 0x250   :  { %543 = vsyncpa [#allocation6], 1 }
 0x251   :  { %545 = vsyncpa [#allocation6 + $0x1], 1 }

</bundles_post_ra>
